<compile_context>
chip_gen: v5e
topology: v5e:2x2
jax: 0.10.0
libtpu: 0.0.40
codegen_flags: <defaults>
</compile_context>

<pallas_src>
import jax
import jax.numpy as jnp
from jax.experimental import pallas as pl
from jax.experimental.pallas import tpu as pltpu


def _round_up(x, m):
    return (x + m - 1) // m * m


def _mlp_kernel(x_ref, w1_ref, b1_ref, w2_ref, b2_ref, o_ref):
    """y = relu(x @ W1 + b1) @ W2 + b2, all tiles resident in VMEM."""
    # Cast activations to the weight compute dtype (bf16) so both matmuls run
    # at full MXU rate; accumulate in fp32.
    x = x_ref[...].astype(w1_ref.dtype)
    h = jnp.dot(x, w1_ref[...], preferred_element_type=jnp.float32)
    h = jnp.maximum(h + b1_ref[...], 0.0)  # bias + ReLU on the fp32 accumulator (VPU)
    # Deliberate precision choice: round fp32 intermediate to bf16 for the
    # second MXU pass (full-rate MXU; acceptable for a projection head).
    y = jnp.dot(h.astype(w2_ref.dtype), w2_ref[...],
                preferred_element_type=jnp.float32)
    o_ref[...] = (y + b2_ref[...]).astype(o_ref.dtype)


def prepare_projection_head_params(w1, b1, w2, b2, *, compute_dtype=jnp.bfloat16):
    """One-time parameter prep (call once, NOT per forward).

    Takes PyTorch-layout params (weight (out, in), bias (out,)), transposes
    weights to (in, out), zero-pads every feature dim to a multiple of 128
    (lane-dense tiles / stores) and casts weights to `compute_dtype` for the
    MXU.  Biases stay fp32 (added to the fp32 accumulator).
    """
    d_nn, d_in = w1.shape
    d_enc, d_nn2 = w2.shape
    assert d_nn2 == d_nn and b1.shape == (d_nn,) and b2.shape == (d_enc,)

    d_in_p, d_nn_p, d_enc_p = (_round_up(d, 128) for d in (d_in, d_nn, d_enc))

    w1_t = jnp.pad(w1.T, ((0, d_in_p - d_in), (0, d_nn_p - d_nn)))
    w2_t = jnp.pad(w2.T, ((0, d_nn_p - d_nn), (0, d_enc_p - d_enc)))
    b1_p = jnp.pad(b1, (0, d_nn_p - d_nn)).reshape(1, d_nn_p)
    b2_p = jnp.pad(b2, (0, d_enc_p - d_enc)).reshape(1, d_enc_p)

    return dict(
        w1=w1_t.astype(compute_dtype),
        b1=b1_p.astype(jnp.float32),
        w2=w2_t.astype(compute_dtype),
        b2=b2_p.astype(jnp.float32),
        d_in=d_in,
        d_enc=d_enc,
    )


def projection_head(x, params, *, tb=None):
    """x: (B, input_size). params: from prepare_projection_head_params.
    Returns (B, encoding_size) in x.dtype."""
    B, d_in = x.shape
    assert d_in == params["d_in"]
    w1, b1, w2, b2 = params["w1"], params["b1"], params["w2"], params["b2"]
    d_in_p, d_nn_p = w1.shape
    _, d_enc_p = w2.shape
    d_enc = params["d_enc"]

    # Batch tile: as large as practical (full MXU row occupancy); whole batch
    # in one grid step for small B.  For big B the grid has >=2 "parallel"
    # steps, letting v7x shard the batch axis across its two TensorCores.
    if tb is None:
        tb = 256
    tb = _round_up(min(tb, _round_up(B, 8)), 8)
    B_p = _round_up(B, tb)

    # Pad ragged batch / non-128-multiple input features.
    if (B_p, d_in_p) != (B, d_in):
        x = jnp.pad(x, ((0, B_p - B), (0, d_in_p - d_in)))

    grid = (B_p // tb,)

    # Rough VMEM budget: double-buffered x/out tiles + resident (double-
    # buffered) weights.  NOTE(perf): for very large heads on v7x (64 MiB
    # VMEM), single-buffer the grid-invariant weight BlockSpecs
    # (pipeline_mode=pl.Buffered(buffer_count=1)) and/or add a K-reduction
    # grid axis with a VMEM fp32 accumulator + pl.when init/finalize.
    est = 2 * (tb * d_in_p * x.dtype.itemsize
               + tb * d_enc_p * x.dtype.itemsize
               + w1.size * w1.dtype.itemsize
               + w2.size * w2.dtype.itemsize
               + b1.size * b1.dtype.itemsize
               + b2.size * b2.dtype.itemsize)
    vmem_limit = int(min(max(est + (8 << 20), 32 << 20), 64 << 20))

    out = pl.pallas_call(
        _mlp_kernel,
        out_shape=jax.ShapeDtypeStruct((B_p, d_enc_p), x.dtype),
        grid_spec=pltpu.PrefetchScalarGridSpec(
            num_scalar_prefetch=0,
            grid=grid,
            in_specs=[
                pl.BlockSpec((tb, d_in_p), lambda i: (i, 0)),
                # Grid-invariant operands: fetched once, stay resident in VMEM.
                pl.BlockSpec((d_in_p, d_nn_p), lambda i: (0, 0)),
                pl.BlockSpec((1, d_nn_p), lambda i: (0, 0)),
                pl.BlockSpec((d_nn_p, d_enc_p), lambda i: (0, 0)),
                pl.BlockSpec((1, d_enc_p), lambda i: (0, 0)),
            ],
            out_specs=pl.BlockSpec((tb, d_enc_p), lambda i: (i, 0)),
        ),
        compiler_params=pltpu.CompilerParams(
            dimension_semantics=("parallel",),
            vmem_limit_bytes=vmem_limit,
        ),
    )(x, w1, b1, w2, b2)

    # Strip batch / lane padding (stores inside the kernel stay lane-dense;
    # this slice is a cheap XLA op on the smallest tensor).
    return out[:B, :d_enc]


if __name__ == "__main__":
    # Small shapes consistent with ProjectionHead(input_size, nn_size, encoding_size).
    B, input_size, nn_size, encoding_size = 16, 256, 128, 100

    key = jax.random.PRNGKey(0)
    kx, kw1, kb1, kw2, kb2 = jax.random.split(key, 5)

    x = jax.random.normal(kx, (B, input_size), dtype=jnp.float32)
    # PyTorch Linear layout: weight (out, in), bias (out,)
    w1 = jax.random.normal(kw1, (nn_size, input_size), dtype=jnp.float32) * 0.02
    b1 = jax.random.normal(kb1, (nn_size,), dtype=jnp.float32) * 0.02
    w2 = jax.random.normal(kw2, (encoding_size, nn_size), dtype=jnp.float32) * 0.02
    b2 = jax.random.normal(kb2, (encoding_size,), dtype=jnp.float32) * 0.02

    # One-time parameter prep (transpose / pad / bf16 cast) -- NOT per call.
    params = prepare_projection_head_params(w1, b1, w2, b2,
                                            compute_dtype=jnp.bfloat16)
    fwd = jax.jit(lambda xx: projection_head(xx, params))

    out = jax.block_until_ready(fwd(x))
    assert out.shape == (B, encoding_size)
    assert out.dtype == x.dtype

    # Matched-precision reference (bf16 operands, fp32 accumulation).
    xb, w1b, w2b = (t.astype(jnp.bfloat16) for t in (x, w1, w2))
    h = jnp.maximum(jnp.dot(xb, w1b.T, preferred_element_type=jnp.float32) + b1, 0.0)
    ref_bf16 = jnp.dot(h.astype(jnp.bfloat16), w2b.T,
                       preferred_element_type=jnp.float32) + b2
    assert jnp.allclose(out, ref_bf16, atol=2e-3, rtol=1e-2), "mismatch vs bf16 ref"

    # Full-fp32 PyTorch-semantics reference (loose tol: bf16 MXU operands).
    ref_f32 = jnp.maximum(x @ w1.T + b1, 0.0) @ w2.T + b2
    assert jnp.allclose(out, ref_f32, atol=3e-2, rtol=3e-2), "mismatch vs fp32 ref"

    print("KERNEL_OK")
</pallas_src>

<mosaic_0001>
module attributes {stable_mosaic.version = 11 : i64} {
  func.func @_mlp_kernel(%arg0: i32, %arg1: memref<16x256xf32, #tpu.memory_space<vmem>>, %arg2: memref<256x128xbf16, #tpu.memory_space<vmem>>, %arg3: memref<1x128xf32, #tpu.memory_space<vmem>>, %arg4: memref<128x128xbf16, #tpu.memory_space<vmem>>, %arg5: memref<1x128xf32, #tpu.memory_space<vmem>>, %arg6: memref<16x128xf32, #tpu.memory_space<vmem>>) attributes {dimension_semantics = [#tpu.dimension_semantics<parallel>], iteration_bounds = array<i64: 1>, scalar_prefetch = 0 : i64, scratch_operands = 0 : i64, tpu.core_type = #tpu.core_type<tc>, window_params = [{transform_indices = @transform_0, window_bounds = array<i64: 16, 256>}, {pipeline_mode = #tpu.pipeline_mode<synchronous>, transform_indices = @transform_1, window_bounds = array<i64: 256, 128>}, {pipeline_mode = #tpu.pipeline_mode<synchronous>, transform_indices = @transform_2, window_bounds = array<i64: 1, 128>}, {pipeline_mode = #tpu.pipeline_mode<synchronous>, transform_indices = @transform_3, window_bounds = array<i64: 128, 128>}, {pipeline_mode = #tpu.pipeline_mode<synchronous>, transform_indices = @transform_4, window_bounds = array<i64: 1, 128>}, {transform_indices = @transform_5, window_bounds = array<i64: 16, 128>}]} {
    %c0 = arith.constant 0 : index
    %c0_0 = arith.constant 0 : index
    %0 = vector.load %arg1[%c0, %c0_0] : memref<16x256xf32, #tpu.memory_space<vmem>>, vector<16x256xf32>
    %1 = arith.truncf %0 : vector<16x256xf32> to vector<16x256xbf16>
    %c0_1 = arith.constant 0 : index
    %c0_2 = arith.constant 0 : index
    %2 = vector.load %arg2[%c0_1, %c0_2] : memref<256x128xbf16, #tpu.memory_space<vmem>>, vector<256x128xbf16>
    %cst = arith.constant dense<0.000000e+00> : vector<16x128xf32>
    %3 = tpu.matmul %1, %2, %cst {dimension_numbers = #tpu.dot_dimension_numbers<[1], [0], [0], [1], [0, 0, 1, 1], [], []>} : vector<16x256xbf16>, vector<256x128xbf16>, vector<16x128xf32> -> vector<16x128xf32>
    %c0_3 = arith.constant 0 : index
    %c0_4 = arith.constant 0 : index
    %4 = vector.load %arg3[%c0_3, %c0_4] : memref<1x128xf32, #tpu.memory_space<vmem>>, vector<1x128xf32>
    %5 = vector.broadcast %4 : vector<1x128xf32> to vector<16x128xf32>
    %6 = arith.addf %3, %5 : vector<16x128xf32>
    %cst_5 = arith.constant 0.000000e+00 : f32
    %7 = vector.broadcast %cst_5 : f32 to vector<16x128xf32>
    %8 = arith.maximumf %6, %7 : vector<16x128xf32>
    %9 = arith.truncf %8 : vector<16x128xf32> to vector<16x128xbf16>
    %c0_6 = arith.constant 0 : index
    %c0_7 = arith.constant 0 : index
    %10 = vector.load %arg4[%c0_6, %c0_7] : memref<128x128xbf16, #tpu.memory_space<vmem>>, vector<128x128xbf16>
    %cst_8 = arith.constant dense<0.000000e+00> : vector<16x128xf32>
    %11 = tpu.matmul %9, %10, %cst_8 {dimension_numbers = #tpu.dot_dimension_numbers<[1], [0], [0], [1], [0, 0, 1, 1], [], []>} : vector<16x128xbf16>, vector<128x128xbf16>, vector<16x128xf32> -> vector<16x128xf32>
    %c0_9 = arith.constant 0 : index
    %c0_10 = arith.constant 0 : index
    %12 = vector.load %arg5[%c0_9, %c0_10] : memref<1x128xf32, #tpu.memory_space<vmem>>, vector<1x128xf32>
    %13 = vector.broadcast %12 : vector<1x128xf32> to vector<16x128xf32>
    %14 = arith.addf %11, %13 : vector<16x128xf32>
    %c0_11 = arith.constant 0 : index
    %c0_12 = arith.constant 0 : index
    %15 = vector.load %arg6[%c0_11, %c0_12] : memref<16x128xf32, #tpu.memory_space<vmem>>, vector<16x128xf32>
    tpu.vector_store %arg6[%c0_11, %c0_12], %14 {strides = array<i32>} : memref<16x128xf32, #tpu.memory_space<vmem>>, vector<16x128xf32>,
    return
  }
  func.func @transform_0(%arg0: i32) -> (i32, i32) {
    %c0_i32 = arith.constant 0 : i32
    %c0_i32_0 = arith.constant 0 : i32
    return %arg0, %c0_i32 : i32, i32
  }
  func.func @transform_1(%arg0: i32) -> (i32, i32) {
    %c0_i32 = arith.constant 0 : i32
    %c0_i32_0 = arith.constant 0 : i32
    %c0_i32_1 = arith.constant 0 : i32
    return %c0_i32, %c0_i32_0 : i32, i32
  }
  func.func @transform_2(%arg0: i32) -> (i32, i32) {
    %c0_i32 = arith.constant 0 : i32
    %c0_i32_0 = arith.constant 0 : i32
    %c0_i32_1 = arith.constant 0 : i32
    return %c0_i32, %c0_i32_0 : i32, i32
  }
  func.func @transform_3(%arg0: i32) -> (i32, i32) {
    %c0_i32 = arith.constant 0 : i32
    %c0_i32_0 = arith.constant 0 : i32
    %c0_i32_1 = arith.constant 0 : i32
    return %c0_i32, %c0_i32_0 : i32, i32
  }
  func.func @transform_4(%arg0: i32) -> (i32, i32) {
    %c0_i32 = arith.constant 0 : i32
    %c0_i32_0 = arith.constant 0 : i32
    %c0_i32_1 = arith.constant 0 : i32
    return %c0_i32, %c0_i32_0 : i32, i32
  }
  func.func @transform_5(%arg0: i32) -> (i32, i32) {
    %c0_i32 = arith.constant 0 : i32
    %c0_i32_0 = arith.constant 0 : i32
    return %arg0, %c0_i32 : i32, i32
  }
}

</mosaic_0001>

<bundles_post_ra>
// kernel: _lambda_.1
= control target key start
LH: loop header
LB: loop body
LE: loop exit
PB: predicated region body
PF: predicated region fallthrough
CT: control target
= control target key end

     0   :  { %10 = vsyncpa [#allocation3], 0  ;;  %s676_s0 = inlined_call_operand.hbm [shape: f32[16,256], index: 0, kind: input, shape index: {}]   ;;  %s677_s1 = inlined_call_operand.hbm [shape: bf16[256,128], index: 1, kind: input, shape index: {}]   ;;  %s678_s2 = inlined_call_operand.hbm [shape: f32[1,128], index: 2, kind: input, shape index: {}]   ;;  %s679_s3 = inlined_call_operand.hbm [shape: bf16[128,128], index: 3, kind: input, shape index: {}]   ;;  %s680_s4 = inlined_call_operand.vmem [shape: f32[1,128], index: 4, kind: input, shape index: {}]   ;;  %s681_s5 = inlined_call_operand.hbm [shape: f32[16,128], index: 5, kind: output, shape index: {}]  }
   0x1   :  { %11 = vsyncpa [#allocation6], 0 }
   0x2   :  { %12 = vsyncpa [#allocation9], 0  ;;  %s31_s20 = sshll.u32 %s677_s1, 4  ;;  %s32_s20 = int_to_ptr.hbm [resolvable:$true] %s31_s20 }
   0x3   :  { %13 = vsyncpa [#allocation4], 0  ;;  %s617_s21 = smov [#allocation5]   ;;  %s18_s25 = sshll.u32 %s676_s0, 4  ;;  %s19_s25 = int_to_ptr.hbm [resolvable:$true] %s18_s25 }
   0x4   :  { %s33_s22 = sshll.u32 %s617_s21, 4  ;;  %s618_s26 = smov 64   ;;  %s34_s22 = int_to_ptr.vmem [resolvable:$true] %s33_s22 }
   0x5   :  { %s619_s27 = smov 4   ;;  %s620_s28 = smov [#allocation2]  }
   0x6   :  { %39 = dma.hbm_to_vmem [thread:$0]  %s32_s20, 2048, %s34_s22, [#allocation6], %s618_s26, %s618_s26, %s619_s27  }
   0x7   :  { %s20_s29 = sshll.u32 %s620_s28, 4  ;;  %s621_s30 = smov 256   ;;  %s21_s29 = int_to_ptr.vmem [resolvable:$true] %s20_s29 }
   0x8   :  { %s622_s6 = smov 16   ;;  %s45_s8 = sshll.u32 %s678_s2, 4  ;;  %s46_s8 = int_to_ptr.hbm [resolvable:$true] %s45_s8 }
   0x9   :  { %26 = dma.hbm_to_vmem [thread:$0]  %s19_s25, 512, %s21_s29, [#allocation3], %s621_s30, %s621_s30, %s622_s6  }
   0xa   :  { %s623_s9 = smov [#allocation7]   ;;  %s55_s12 = sshll.u32 %s679_s3, 4  ;;  %s56_s12 = int_to_ptr.hbm [resolvable:$true] %s55_s12 }
   0xb   :  { %s47_s10 = sshll.u32 %s623_s9, 4  ;;  %s624_s13 = smov [#allocation8]   ;;  %s48_s10 = int_to_ptr.vmem [resolvable:$true] %s47_s10 }
   0xc   :  { %50 = dma.hbm_to_vmem [thread:$0]  %s46_s8, 16, %s48_s10, [#allocation6]  }
   0xd   :  { %s57_s14 = sshll.u32 %s624_s13, 4  ;;  %s58_s14 = int_to_ptr.vmem [resolvable:$true] %s57_s14 }
   0xe   :  { %63 = dma.hbm_to_vmem [thread:$0]  %s56_s12, 1024, %s58_s14, [#allocation9], %s618_s26, %s618_s26, %s619_s27  }
   0xf   :  { %609 = dma.done.wait [#allocation3], 512  }
  0x10   :  { %610 = vsyncadd [#allocation3], 4294966784 }
  0x11   :  { %611 = dma.done.wait [#allocation6], 2064  }
  0x12   :  { %612 = vsyncadd [#allocation6], 4294965232 }
  0x13   :  { %613 = dma.done.wait [#allocation9], 1024  }
  0x14   :  { %614 = vsyncadd [#allocation9], 4294966272  ;;  %v459_v0 = vld [vmem:[#allocation5 + $0x38] sm:$0xff]  ;;  %v458_v2 = vld [vmem:[#allocation5 + $0x30] sm:$0xff]  ;;  %s625_s15 = smov [#allocation10]   ;;  %s341_s19 = sshll.u32 %s681_s5, 4  ;;  %s342_s19 = int_to_ptr.hbm [resolvable:$true] %s341_s19 }
  0x15   :  { %v467_v1 = vld [vmem:[#allocation5 + $0x78] sm:$0xff]  ;;  %220 = vmatpush.bf16.msra.mxu0 %v459_v0  ;;  %v466_v3 = vld [vmem:[#allocation5 + $0x70] sm:$0xff]  ;;  %v457_v4 = vld [vmem:[#allocation5 + $0x28] sm:$0xff]  ;;  %s339_s16 = sshll.u32 %s625_s15, 4  ;;  %s626_s20 = smov 128   ;;  %s340_s16 = int_to_ptr.vmem [resolvable:$true] %s339_s16 }
  0x16   :  { %234 = vmatpush.bf16.msra.mxu1 %v467_v1  ;;  %v465_v5 = vld [vmem:[#allocation5 + $0x68] sm:$0xff]  ;;  %v475_v6 = vld [vmem:[#allocation8 + $0x38] sm:$0xff]  ;;  %v474_v7 = vld [vmem:[#allocation8 + $0x30] sm:$0xff]  ;;  %s627_s21 = smov 8  }
  0x17   :  { %319 = vmatpush.bf16.msra.mxu2 %v475_v6  ;;  %v456_v8 = vld [vmem:[#allocation5 + $0x20] sm:$0xff]  ;;  %v473_v10 = vld [vmem:[#allocation8 + $0x28] sm:$0xff]  ;;  %v455_v11 = vld [vmem:[#allocation5 + $0x18] sm:$0xff] }
  0x18   :  { %v464_v9 = vld [vmem:[#allocation5 + $0x60] sm:$0xff]  ;;  %v463_v12 = vld [vmem:[#allocation5 + $0x58] sm:$0xff]  ;;  %v454_v14 = vld [vmem:[#allocation5 + $0x10] sm:$0xff] }
  0x19   :  { %221 = vmatpush.bf16.msra.mxu0 %v458_v2  ;;  %v472_v13 = vld [vmem:[#allocation8 + $0x20] sm:$0xff]  ;;  %v462_v15 = vld [vmem:[#allocation5 + $0x50] sm:$0xff]  ;;  %v85_v23 = vld [vmem:[#allocation2 + $0x18] sm:$0xff] }
  0x1a   :  { %235 = vmatpush.bf16.msra.mxu1 %v466_v3  ;;  %v453_v16 = vld [vmem:[#allocation5 + $0x8] sm:$0xff]  ;;  %v452_v18 = vld [vmem:[#allocation5] sm:$0xff]  ;;  %v84_v21 = vld [vmem:[#allocation2 + $0x10] sm:$0xff] }
  0x1b   :  { %320 = vmatpush.bf16.msra.mxu2 %v474_v7  ;;  %v461_v17 = vld [vmem:[#allocation5 + $0x48] sm:$0xff]  ;;  %v460_v19 = vld [vmem:[#allocation5 + $0x40] sm:$0xff]  ;;  %v470_v27 = vld [vmem:[#allocation8 + $0x10] sm:$0xff] }
  0x1c   :  { %v82_v20 = vld [vmem:[#allocation2] sm:$0xff]  ;;  %v83_v22 = vld [vmem:[#allocation2 + $0x8] sm:$0xff] }
  0x1d   :  { %222 = vmatpush.bf16.msra.mxu0 %v457_v4  ;;  %v86_v24 = vpack.c.bf16 %v84_v21, %v82_v20  ;;  %v87_v25 = vpack.c.bf16 %v85_v23, %v83_v22  ;;  %v471_v26 = vld [vmem:[#allocation8 + $0x18] sm:$0xff]  ;;  %v469_v28 = vld [vmem:[#allocation8 + $0x8] sm:$0xff]  ;;  %v468_v29 = vld [vmem:[#allocation8] sm:$0xff] }
  0x1e   :  { %236 = vmatpush.bf16.msra.mxu1 %v465_v5  ;;  %v487_v32 = vld [vmem:[#allocation7] ss:$0 sm:$0xff] }
  0x1f   :  { %321 = vmatpush.bf16.msra.mxu2 %v473_v10  ;;  %v488_v42 = vld [vmem:[%s680_s4] ss:$0 sm:$0xff] }
  0x21   :  { %223 = vmatpush.bf16.msra.mxu0 %v456_v8 }
  0x22   :  { %237 = vmatpush.bf16.msra.mxu1 %v464_v9 }
  0x23   :  { %322 = vmatpush.bf16.msra.mxu2 %v472_v13 }
  0x25   :  { %224 = vmatpush.bf16.msra.mxu0 %v455_v11 }
  0x26   :  { %238 = vmatpush.bf16.msra.mxu1 %v463_v12 }
  0x27   :  { %323 = vmatpush.bf16.msra.mxu2 %v471_v26 }
  0x29   :  { %225 = vmatpush.bf16.msra.mxu0 %v454_v14 }
  0x2a   :  { %239 = vmatpush.bf16.msra.mxu1 %v462_v15 }
  0x2b   :  { %324 = vmatpush.bf16.msra.mxu2 %v470_v27 }
  0x2d   :  { %226 = vmatpush.bf16.msra.mxu0 %v453_v16 }
  0x2e   :  { %240 = vmatpush.bf16.msra.mxu1 %v461_v17 }
  0x2f   :  { %325 = vmatpush.bf16.msra.mxu2 %v469_v28 }
  0x31   :  { %227 = vmatpush.bf16.msra.mxu0 %v452_v18 }
  0x32   :  { %241 = vmatpush.bf16.msra.mxu1 %v460_v19 }
  0x33   :  { %326 = vmatpush.bf16.msra.mxu2 %v468_v29 }
  0x34   :  { %228 = vmatmul.bf16.vlgmr.msra.gmra.mxu0 %v86_v24 }
  0x35   :  { %242 = vmatmul.bf16.vlgmr.msra.gmra.mxu1 %v87_v25 }
  0xb1   :  { %v229_v30 = vpop.f32.mrf.mxu0 }
  0xb2   :  { %v243_v31 = vpop.f32.mrf.mxu1  ;;  %v230_v33 = vadd.f32 %v487_v32, %v229_v30 }
  0xb4   :  { %v244_v35 = vadd.f32 %v243_v31, %v230_v33 }
  0xb6   :  { %v248_v39 = vmax.f32 %v244_v35, 0.0 }
  0xb9   :  { %v231_v34 = vpop.f32.mrf.mxu0 }
  0xba   :  { %v232_v36 = vadd.f32 %v487_v32, %v231_v34  ;;  %v245_v37 = vpop.f32.mrf.mxu1 }
  0xbc   :  { %v246_v38 = vadd.f32 %v245_v37, %v232_v36 }
  0xbe   :  { %v249_v40 = vmax.f32 %v246_v38, 0.0 }
  0xc0   :  { %v250_v41 = vpack.c.bf16 %v249_v40, %v248_v39 }
  0xc2   :  { %327 = vmatmul.bf16.vlgmr.msra.gmra.mxu2 %v250_v41 }
 0x145   :  { %v328_v43 = vpop.f32.mrf.mxu2 }
 0x146   :  { %v329_v44 = vadd.f32 %v488_v42, %v328_v43 }
 0x148   :  { %333 = vst [vmem:[#allocation10] sm:$0xff] %v329_v44 }
 0x14d   :  { %v330_v45 = vpop.f32.mrf.mxu2 }
 0x14e   :  { %v331_v46 = vadd.f32 %v488_v42, %v330_v45 }
 0x150   :  { %334 = vst [vmem:[#allocation10 + $0x8] sm:$0xff] %v331_v46 }
 0x151   :  { %347 = dma.vmem_to_hbm [thread:$0]  %s340_s16, 256, %s342_s19, [#allocation4], %s626_s20, %s626_s20, %s627_s21  }
 0x152   :  { %615 = dma.done.wait [#allocation4], 256  }
 0x153   :  { %616 = vsyncadd [#allocation4], 4294967040 }
 0x154   :  { %352 = vsyncpa [#allocation3], 1 }
 0x155   :  { %353 = vsyncpa [#allocation6], 1 }
 0x156   :  { %354 = vsyncpa [#allocation9], 1 }
 0x157   :  { %355 = vsyncpa [#allocation4], 1 }

</bundles_post_ra>
